<compile_context>
chip_gen: v6e
topology: v6e:2x2x1
jax: 0.10.0
libtpu: 0.0.40
codegen_flags: <defaults>
</compile_context>

<pallas_src>
import jax
import jax.numpy as jnp
from jax import lax
from jax.experimental import pallas as pl
from jax.experimental.pallas import tpu as pltpu


def _round_up(x, m):
    return (x + m - 1) // m * m


def _cdiv(a, b):
    return (a + b - 1) // b


def _qfunc_kernel(obs_ref, act_ref, w1a_ref, w1b_ref, b1_ref,
                  w2_ref, b2_ref, w3_ref, b3_ref, o_ref):
    """One batch tile of the Q-function MLP, feature-major (batch on lanes).

    obs_ref: (TILE_B, obs_dim) f32     act_ref: (TILE_B, act_dim) f32
    w1a:     (H1, obs_dim) bf16        w1b:     (H1, act_dim) bf16
    b1:      (H1, 1) f32
    w2:      (H2, H1) bf16             b2:      (H2, 1) f32
    w3:      (1, H2) bf16              b3:      (1,) f32 in SMEM
    o_ref:   (1, 1, TILE_B) f32  -- batch on the lane axis (lane-dense store)
    """
    # Cast activations to bf16 in VMEM (MXU is bf16-native); accumulate in f32.
    obs = obs_ref[...].astype(jnp.bfloat16)          # (TILE_B, obs_dim)
    act = act_ref[...].astype(jnp.bfloat16)          # (TILE_B, act_dim)

    # Layer 1:  h[f, b] = sum_k W1a[f,k]*obs[b,k] + sum_k W1b[f,k]*act[b,k]
    # (== (cat([obs, act]) @ W1)^T, the concat eliminated algebraically).
    # NT dot_generals keep the batch on the lane axis -> full MXU occupancy.
    nt = (((1,), (1,)), ((), ()))
    h = lax.dot_general(w1a_ref[...], obs, nt, preferred_element_type=jnp.float32)
    h = h + lax.dot_general(w1b_ref[...], act, nt, preferred_element_type=jnp.float32)
    h = jnp.maximum(h + b1_ref[...], 0.0)            # (H1, TILE_B); bias bcast on lanes

    # Layer 2: (H2, H1) @ (H1, TILE_B) -> (H2, TILE_B)
    h = jnp.dot(w2_ref[...], h.astype(jnp.bfloat16), preferred_element_type=jnp.float32)
    h = jnp.maximum(h + b2_ref[...], 0.0)

    # Layer 3 (width-1 head), already lane-dense: (1, H2) @ (H2, TILE_B) -> (1, TILE_B)
    q = jnp.dot(w3_ref[...], h.astype(jnp.bfloat16), preferred_element_type=jnp.float32)
    o_ref[0] = (q + b3_ref[0]).astype(o_ref.dtype)


def _xla_forward(obs, act, params):
    """Plain XLA path for tiny batches (identical math, f32)."""
    w1, b1, w2, b2, w3, b3 = params
    obs_dim = obs.shape[1]
    h = jnp.maximum(obs @ w1[:obs_dim] + act @ w1[obs_dim:] + b1, 0.0)
    h = jnp.maximum(h @ w2 + b2, 0.0)
    return jnp.squeeze(h @ w3 + b3, -1)


def mlp_q_function(obs, act, params, *, tile_b=4096, min_pallas_batch=256):
    """obs: (B, obs_dim), act: (B, act_dim) -> q: (B,) float32."""
    w1, b1, w2, b2, w3, b3 = params
    B, obs_dim = obs.shape
    act_dim = act.shape[1]
    h1 = w1.shape[1]
    h2 = w2.shape[1]

    # Tiny batches: padding to a 128-row tile plus fixed kernel overhead costs
    # more than the whole computation; XLA's fused GEMM path wins here.
    if B <= min_pallas_batch:
        return _xla_forward(obs, act, params)

    # ---- parameter prep (tiny arrays; done once per call in XLA) -----------
    w1a_t = w1[:obs_dim].T.astype(jnp.bfloat16)      # (H1, obs_dim)
    w1b_t = w1[obs_dim:].T.astype(jnp.bfloat16)      # (H1, act_dim)
    w2_t = w2.T.astype(jnp.bfloat16)                 # (H2, H1)
    w3_t = w3.T.astype(jnp.bfloat16)                 # (1, H2)   (w3 stored (H2, 1))
    b1_c = b1.reshape(h1, 1).astype(jnp.float32)     # column bias, lane broadcast
    b2_c = b2.reshape(h2, 1).astype(jnp.float32)
    b3_s = b3.reshape(1).astype(jnp.float32)         # scalar -> SMEM

    # ---- batch tiling -------------------------------------------------------
    # Large tiles amortize the ~0.35 us per-grid-step overhead.  Cap at 8192 so
    # padded, double-buffered (TILE_B, 128-lane) obs/act blocks + intermediates
    # leave headroom on v7x's 64 MiB VMEM (and v5e's 16 MiB scoped default once
    # vmem_limit_bytes is raised below).
    tile = _round_up(max(128, min(int(tile_b), 8192)), 128)
    b_pad = _round_up(B, 128)
    tile = min(tile, b_pad)
    num_tiles = _cdiv(b_pad, tile)
    # Prefer an even (>=2) number of grid steps so the "parallel" batch axis
    # balances across v7x's two TensorCores (best effort; costs at most one
    # extra ~0.35 us step on single-TC v5e/v6e).
    if num_tiles % 2 == 1 and b_pad > 128:
        tile = _round_up(_cdiv(b_pad, num_tiles + 1), 128)
        num_tiles = _cdiv(b_pad, tile)
    b_pad = num_tiles * tile

    if b_pad != B:
        pad = ((0, b_pad - B), (0, 0))
        obs = jnp.pad(obs, pad)
        act = jnp.pad(act, pad)

    # Scoped-VMEM budget from the padded tile footprint: obs/act blocks pad their
    # lane dim to 128 (f32: ~tile*512 B each, x2 double-buffering), plus
    # (features, tile) intermediates and the (8, tile)-padded output block.
    vmem_limit = int(min(max(tile * 3072 + (4 << 20), 16 << 20), 48 << 20))

    q = pl.pallas_call(
        _qfunc_kernel,
        out_shape=jax.ShapeDtypeStruct((num_tiles, 1, tile), jnp.float32),
        grid=(num_tiles,),
        in_specs=[
            pl.BlockSpec((tile, obs_dim), lambda i: (i, 0)),    # obs tile
            pl.BlockSpec((tile, act_dim), lambda i: (i, 0)),    # act tile
            pl.BlockSpec((h1, obs_dim), lambda i: (0, 0)),      # W1a^T (VMEM-resident)
            pl.BlockSpec((h1, act_dim), lambda i: (0, 0)),      # W1b^T
            pl.BlockSpec((h1, 1), lambda i: (0, 0)),            # b1 column
            pl.BlockSpec((h2, h1), lambda i: (0, 0)),           # W2^T
            pl.BlockSpec((h2, 1), lambda i: (0, 0)),            # b2 column
            pl.BlockSpec((1, h2), lambda i: (0, 0)),            # w3 row
            pl.BlockSpec(memory_space=pltpu.MemorySpace.SMEM),  # b3 scalar
        ],
        out_specs=pl.BlockSpec((1, 1, tile), lambda i: (i, 0, 0)),
        compiler_params=pltpu.CompilerParams(
            dimension_semantics=("parallel",),       # megacore shard on v7x
            vmem_limit_bytes=vmem_limit),
    )(obs, act, w1a_t, w1b_t, b1_c, w2_t, b2_c, w3_t, b3_s)

    # (num_tiles, 1, tile) is contiguous batch order; flatten + drop padding.
    return q.reshape(-1)[:B]


def init_params(key, obs_dim, act_dim, hidden_sizes):
    """Deterministic synthetic init (uniform, PyTorch-Linear-style bounds).

    Weights are stored as (in_features, out_features) — the transpose of
    nn.Linear's (out, in) storage — biases as (1, out_features).
    """
    sizes = [obs_dim + act_dim] + list(hidden_sizes) + [1]
    params = []
    for j in range(len(sizes) - 1):
        key, kw, kb = jax.random.split(key, 3)
        fan_in, fan_out = sizes[j], sizes[j + 1]
        bound = 1.0 / (fan_in ** 0.5)
        w = jax.random.uniform(kw, (fan_in, fan_out), jnp.float32, -bound, bound)
        b = jax.random.uniform(kb, (1, fan_out), jnp.float32, -bound, bound)
        params += [w, b]
    return tuple(params)


def _reference(obs, act, params):
    w1, b1, w2, b2, w3, b3 = params
    x = jnp.concatenate([obs, act], axis=-1)
    h = jnp.maximum(x @ w1 + b1, 0.0)
    h = jnp.maximum(h @ w2 + b2, 0.0)
    return jnp.squeeze(h @ w3 + b3, -1)


if __name__ == "__main__":
    OBS_DIM, ACT_DIM = 8, 4
    HIDDEN_SIZES = (32, 32)

    key = jax.random.PRNGKey(0)
    k_params, k1, k2, k3, k4, k5, k6 = jax.random.split(key, 7)
    params = init_params(k_params, OBS_DIM, ACT_DIM, HIDDEN_SIZES)

    # Case 1: tiny batch -> XLA fallback path (exact f32 math).
    B0 = 8
    obs0 = jax.random.normal(k1, (B0, OBS_DIM), jnp.float32)
    act0 = jax.random.normal(k2, (B0, ACT_DIM), jnp.float32)
    q0 = mlp_q_function(obs0, act0, params)
    jax.block_until_ready(q0)
    assert q0.shape == (B0,)
    assert jnp.allclose(q0, _reference(obs0, act0, params), atol=1e-5, rtol=1e-5)

    # Case 2: Pallas path, default tile -> even-split heuristic gives 2 grid
    # steps of 512 rows (no padding).  bf16 MXU operands -> looser tolerance.
    B1 = 1024
    obs1 = jax.random.normal(k3, (B1, OBS_DIM), jnp.float32)
    act1 = jax.random.normal(k4, (B1, ACT_DIM), jnp.float32)
    q1 = mlp_q_function(obs1, act1, params)
    jax.block_until_ready(q1)
    assert q1.shape == (B1,)
    assert jnp.allclose(q1, _reference(obs1, act1, params), atol=3e-2, rtol=3e-2)

    # Case 3: Pallas path, non-divisible batch -> padding + 4-tile even grid.
    B2 = 1300
    obs2 = jax.random.normal(k5, (B2, OBS_DIM), jnp.float32)
    act2 = jax.random.normal(k6, (B2, ACT_DIM), jnp.float32)
    q2 = mlp_q_function(obs2, act2, params, tile_b=512)
    jax.block_until_ready(q2)
    assert q2.shape == (B2,)
    assert jnp.allclose(q2, _reference(obs2, act2, params), atol=3e-2, rtol=3e-2)

    print("KERNEL_OK")
</pallas_src>

<mosaic_0001>
module attributes {stable_mosaic.version = 11 : i64} {
  func.func @_qfunc_kernel(%arg0: i32, %arg1: memref<512x8xf32, #tpu.memory_space<vmem>>, %arg2: memref<512x4xf32, #tpu.memory_space<vmem>>, %arg3: memref<32x8xbf16, #tpu.memory_space<vmem>>, %arg4: memref<32x4xbf16, #tpu.memory_space<vmem>>, %arg5: memref<32x1xf32, #tpu.memory_space<vmem>>, %arg6: memref<32x32xbf16, #tpu.memory_space<vmem>>, %arg7: memref<32x1xf32, #tpu.memory_space<vmem>>, %arg8: memref<1x32xbf16, #tpu.memory_space<vmem>>, %arg9: memref<1xf32, #tpu.memory_space<smem>>, %arg10: memref<1x1x512xf32, #tpu.memory_space<vmem>>) attributes {dimension_semantics = [#tpu.dimension_semantics<parallel>], iteration_bounds = array<i64: 2>, scalar_prefetch = 0 : i64, scratch_operands = 0 : i64, tpu.core_type = #tpu.core_type<tc>, window_params = [{transform_indices = @transform_0, window_bounds = array<i64: 512, 8>}, {transform_indices = @transform_1, window_bounds = array<i64: 512, 4>}, {pipeline_mode = #tpu.pipeline_mode<synchronous>, transform_indices = @transform_2, window_bounds = array<i64: 32, 8>}, {pipeline_mode = #tpu.pipeline_mode<synchronous>, transform_indices = @transform_3, window_bounds = array<i64: 32, 4>}, {pipeline_mode = #tpu.pipeline_mode<synchronous>, transform_indices = @transform_4, window_bounds = array<i64: 32, 1>}, {pipeline_mode = #tpu.pipeline_mode<synchronous>, transform_indices = @transform_5, window_bounds = array<i64: 32, 32>}, {pipeline_mode = #tpu.pipeline_mode<synchronous>, transform_indices = @transform_6, window_bounds = array<i64: 32, 1>}, {pipeline_mode = #tpu.pipeline_mode<synchronous>, transform_indices = @transform_7, window_bounds = array<i64: 1, 32>}, {transform_indices = @transform_8, window_bounds = array<i64: 1>}, {transform_indices = @transform_9, window_bounds = array<i64: 1, 1, 512>}]} {
    %c0 = arith.constant 0 : index
    %c0_0 = arith.constant 0 : index
    %0 = vector.load %arg1[%c0, %c0_0] : memref<512x8xf32, #tpu.memory_space<vmem>>, vector<512x8xf32>
    %1 = arith.truncf %0 : vector<512x8xf32> to vector<512x8xbf16>
    %c0_1 = arith.constant 0 : index
    %c0_2 = arith.constant 0 : index
    %2 = vector.load %arg2[%c0_1, %c0_2] : memref<512x4xf32, #tpu.memory_space<vmem>>, vector<512x4xf32>
    %3 = arith.truncf %2 : vector<512x4xf32> to vector<512x4xbf16>
    %c0_3 = arith.constant 0 : index
    %c0_4 = arith.constant 0 : index
    %4 = vector.load %arg3[%c0_3, %c0_4] : memref<32x8xbf16, #tpu.memory_space<vmem>>, vector<32x8xbf16>
    %cst = arith.constant dense<0.000000e+00> : vector<32x512xf32>
    %5 = tpu.matmul %4, %1, %cst {dimension_numbers = #tpu.dot_dimension_numbers<[1], [1], [0], [0], [0, 0, 1, 0], [], []>} : vector<32x8xbf16>, vector<512x8xbf16>, vector<32x512xf32> -> vector<32x512xf32>
    %c0_5 = arith.constant 0 : index
    %c0_6 = arith.constant 0 : index
    %6 = vector.load %arg4[%c0_5, %c0_6] : memref<32x4xbf16, #tpu.memory_space<vmem>>, vector<32x4xbf16>
    %cst_7 = arith.constant dense<0.000000e+00> : vector<32x512xf32>
    %7 = tpu.matmul %6, %3, %cst_7 {dimension_numbers = #tpu.dot_dimension_numbers<[1], [1], [0], [0], [0, 0, 1, 0], [], []>} : vector<32x4xbf16>, vector<512x4xbf16>, vector<32x512xf32> -> vector<32x512xf32>
    %8 = arith.addf %5, %7 : vector<32x512xf32>
    %c0_8 = arith.constant 0 : index
    %c0_9 = arith.constant 0 : index
    %9 = vector.load %arg5[%c0_8, %c0_9] : memref<32x1xf32, #tpu.memory_space<vmem>>, vector<32x1xf32>
    %10 = vector.broadcast %9 : vector<32x1xf32> to vector<32x512xf32>
    %11 = arith.addf %8, %10 : vector<32x512xf32>
    %cst_10 = arith.constant 0.000000e+00 : f32
    %12 = vector.broadcast %cst_10 : f32 to vector<32x512xf32>
    %13 = arith.maximumf %11, %12 : vector<32x512xf32>
    %c0_11 = arith.constant 0 : index
    %c0_12 = arith.constant 0 : index
    %14 = vector.load %arg6[%c0_11, %c0_12] : memref<32x32xbf16, #tpu.memory_space<vmem>>, vector<32x32xbf16>
    %15 = arith.truncf %13 : vector<32x512xf32> to vector<32x512xbf16>
    %cst_13 = arith.constant dense<0.000000e+00> : vector<32x512xf32>
    %16 = tpu.matmul %14, %15, %cst_13 {dimension_numbers = #tpu.dot_dimension_numbers<[1], [0], [0], [1], [0, 0, 1, 1], [], []>} : vector<32x32xbf16>, vector<32x512xbf16>, vector<32x512xf32> -> vector<32x512xf32>
    %c0_14 = arith.constant 0 : index
    %c0_15 = arith.constant 0 : index
    %17 = vector.load %arg7[%c0_14, %c0_15] : memref<32x1xf32, #tpu.memory_space<vmem>>, vector<32x1xf32>
    %18 = vector.broadcast %17 : vector<32x1xf32> to vector<32x512xf32>
    %19 = arith.addf %16, %18 : vector<32x512xf32>
    %cst_16 = arith.constant 0.000000e+00 : f32
    %20 = vector.broadcast %cst_16 : f32 to vector<32x512xf32>
    %21 = arith.maximumf %19, %20 : vector<32x512xf32>
    %c0_17 = arith.constant 0 : index
    %c0_18 = arith.constant 0 : index
    %22 = vector.load %arg8[%c0_17, %c0_18] : memref<1x32xbf16, #tpu.memory_space<vmem>>, vector<1x32xbf16>
    %23 = arith.truncf %21 : vector<32x512xf32> to vector<32x512xbf16>
    %cst_19 = arith.constant dense<0.000000e+00> : vector<1x512xf32>
    %24 = tpu.matmul %22, %23, %cst_19 {dimension_numbers = #tpu.dot_dimension_numbers<[1], [0], [0], [1], [0, 0, 1, 1], [], []>} : vector<1x32xbf16>, vector<32x512xbf16>, vector<1x512xf32> -> vector<1x512xf32>
    %c0_20 = arith.constant 0 : index
    %25 = memref.load %arg9[%c0_20] : memref<1xf32, #tpu.memory_space<smem>>
    %26 = vector.broadcast %25 : f32 to vector<1x512xf32>
    %27 = arith.addf %24, %26 : vector<1x512xf32>
    %c0_21 = arith.constant 0 : index
    %c0_22 = arith.constant 0 : index
    %c0_23 = arith.constant 0 : index
    %28 = vector.load %arg10[%c0_21, %c0_22, %c0_23] : memref<1x1x512xf32, #tpu.memory_space<vmem>>, vector<1x1x512xf32>
    %29 = vector.shape_cast %28 : vector<1x1x512xf32> to vector<1x512xf32>
    %30 = vector.shape_cast %27 : vector<1x512xf32> to vector<1x1x512xf32>
    tpu.vector_store %arg10[%c0_21, %c0_22, %c0_23], %30 {strides = array<i32>} : memref<1x1x512xf32, #tpu.memory_space<vmem>>, vector<1x1x512xf32>,
    return
  }
  func.func @transform_0(%arg0: i32) -> (i32, i32) {
    %c0_i32 = arith.constant 0 : i32
    %c0_i32_0 = arith.constant 0 : i32
    return %arg0, %c0_i32 : i32, i32
  }
  func.func @transform_1(%arg0: i32) -> (i32, i32) {
    %c0_i32 = arith.constant 0 : i32
    %c0_i32_0 = arith.constant 0 : i32
    return %arg0, %c0_i32 : i32, i32
  }
  func.func @transform_2(%arg0: i32) -> (i32, i32) {
    %c0_i32 = arith.constant 0 : i32
    %c0_i32_0 = arith.constant 0 : i32
    %c0_i32_1 = arith.constant 0 : i32
    return %c0_i32, %c0_i32_0 : i32, i32
  }
  func.func @transform_3(%arg0: i32) -> (i32, i32) {
    %c0_i32 = arith.constant 0 : i32
    %c0_i32_0 = arith.constant 0 : i32
    %c0_i32_1 = arith.constant 0 : i32
    return %c0_i32, %c0_i32_0 : i32, i32
  }
  func.func @transform_4(%arg0: i32) -> (i32, i32) {
    %c0_i32 = arith.constant 0 : i32
    %c0_i32_0 = arith.constant 0 : i32
    %c0_i32_1 = arith.constant 0 : i32
    return %c0_i32, %c0_i32_0 : i32, i32
  }
  func.func @transform_5(%arg0: i32) -> (i32, i32) {
    %c0_i32 = arith.constant 0 : i32
    %c0_i32_0 = arith.constant 0 : i32
    %c0_i32_1 = arith.constant 0 : i32
    return %c0_i32, %c0_i32_0 : i32, i32
  }
  func.func @transform_6(%arg0: i32) -> (i32, i32) {
    %c0_i32 = arith.constant 0 : i32
    %c0_i32_0 = arith.constant 0 : i32
    %c0_i32_1 = arith.constant 0 : i32
    return %c0_i32, %c0_i32_0 : i32, i32
  }
  func.func @transform_7(%arg0: i32) -> (i32, i32) {
    %c0_i32 = arith.constant 0 : i32
    %c0_i32_0 = arith.constant 0 : i32
    %c0_i32_1 = arith.constant 0 : i32
    return %c0_i32, %c0_i32_0 : i32, i32
  }
  func.func @transform_8(%arg0: i32) -> i32 {
    %c0_i32 = arith.constant 0 : i32
    %c0_i32_0 = arith.constant 0 : i32
    return %c0_i32 : i32
  }
  func.func @transform_9(%arg0: i32) -> (i32, i32, i32) {
    %c0_i32 = arith.constant 0 : i32
    %c0_i32_0 = arith.constant 0 : i32
    %c0_i32_1 = arith.constant 0 : i32
    return %arg0, %c0_i32, %c0_i32_0 : i32, i32, i32
  }
}

</mosaic_0001>

<bundles_post_ra>
// kernel: tpu_custom_call.1
= control target key start
LH: loop header
LB: loop body
LE: loop exit
PB: predicated region body
PF: predicated region fallthrough
CT: control target
= control target key end

     0   :  { %s2135_s0 = inlined_call_operand.vmem [shape: f32[1024,8], index: 0, kind: input, shape index: {}]   ;;  %s2136_s1 = inlined_call_operand.vmem [shape: f32[1024,4], index: 1, kind: input, shape index: {}]   ;;  %s2137_s2 = inlined_call_operand.vmem [shape: bf16[32,8], index: 2, kind: input, shape index: {}]   ;;  %s2138_s3 = inlined_call_operand.vmem [shape: bf16[32,4], index: 3, kind: input, shape index: {}]   ;;  %s2139_s4 = inlined_call_operand.vmem [shape: f32[32,1], index: 4, kind: input, shape index: {}]   ;;  %s2140_s5 = inlined_call_operand.vmem [shape: bf16[32,32], index: 5, kind: input, shape index: {}]   ;;  %s2141_s6 = inlined_call_operand.vmem [shape: f32[32,1], index: 6, kind: input, shape index: {}]   ;;  %s2142_s7 = inlined_call_operand.vmem [shape: bf16[1,32], index: 7, kind: input, shape index: {}]   ;;  %s2143_s8 = inlined_call_operand.<no memory space> [shape: f32[1], index: 8, kind: input, shape index: {}]   ;;  %s2144_s9 = inlined_call_operand.hbm [shape: f32[2,1,512], index: 9, kind: output, shape index: {}]  }
   0x1   :  { %14 = sst [smem:[#allocation2]] %s2143_s8 }
   0x2   :  { %15 = vsyncpa [#allocation4], 0 }
   0x3   :  { %17 = vsyncpa [#allocation4 + $0x1], 0  ;;  %s1756_s11 = smov 0   ;;  %s1758_s12 = smov 0  }
   0x4   :  { %s1760_s13 = smov 0   ;;  %s1762_s14 = smov 0  }
   0x5 LB: > { %s1441_s8 = sadd.s32 4294967295, %s1698_s14   ;;  %s1442_s15 = sadd.s32 4294967294, %s1698_s14   ;;  %s1698_s14 = sphi %s1762_s14, %s2150_s14   ;;  %s1694_s13 = sphi %s1760_s13, %s2149_s13   ;;  %s1690_s12 = sphi %s1758_s12, %s2148_s12   ;;  %s1686_s11 = sphi %s1756_s11, %s2147_s11  }
   0x6   : > { %s1779_s16 = sadd.s32 1, %s1698_s14   ;;  %s229_s17 = sadd.s32 1, %s1694_s13 }
   0x7   : > { %s226_s18 = ssub.s32 %s1698_s14, %s1779_s16  ;;  %p239_p0 = scmp.ne.s32.totalorder %s1694_s13, %s1690_s12 }
   0x8   : > { %p227_p1 = scmp.eq.s32.totalorder %s226_s18, 0  ;;  %p240_p2 = scmp.eq.s32.totalorder %s1441_s8, 1 }
   0x9   : > { %p245_p3 = scmp.ne.s32.totalorder %s1690_s12, %s1686_s11  ;;  %p246_p4 = scmp.eq.s32.totalorder %s1442_s15, 1 }
   0xa   : > { %s1789_s19 = scalar_select %p227_p1, %s1694_s13, %s229_s17  }
   0xb   : > { %p1791_p5 = por %p240_p2, %p239_p0  ;;  %p1795_p6 = por %p246_p4, %p245_p3 }
   0xc   : > { %p1445_p7 = scmp.ge.s32.totalorder %s1698_s14, 1  ;;  %p303_p8 = scmp.lt.s32.totalorder %s1698_s14, 3 }
   0xe   : > { %p304_p9 = pnand %p1445_p7, %p303_p8 }
   0xf   : > { %s1801_s22 = sshll.u32 (!%p304_p9), %s1441_s8, 6  ;;  %s1702_s18 = smov (!%p304_p9), [#allocation3]  }
  0x10   : > { %307 = sbr.rel (%p304_p9) target bundleno = 821 (0x335), region = 56  ;;  %p345_p10 = scmp.lt.s32.totalorder (!%p304_p9), %s1801_s22, 127 }
  0x11   : > { %s1369_s8 = scalar_lea.hbm (!%p304_p9), %s2144_s9, %s1801_s22  ;;  %s1642_s23 = sshll.u32 (!%p304_p9), %s1702_s18, 4  ;;  %s1643_s23 = int_to_ptr.vmem [resolvable:$false] %s1642_s23 }
  0x12   : > { %s1644_s24 = scalar_lea.vmem (!%p304_p9), %s1643_s23, 128 }
  0x15   : > { %vm567_vm0 = vcmask 31744   ;;  %v1807_v0 = vld [vmem:[%s2138_s3] sm:$0xff]   ;;  %s1810_s25 = scalar_select %p345_p10, %s1801_s22, 127  ;;  %v1700_v43 = vmov 0   ;;  %vm786_vm1 = vcmask 64512   ;;  %vm1097_vm2 = vcmask 261120  }
  0x16   : > { %1493 = vmatprep.mubr.msk.bf16.mxu0 %vm567_vm0, %v1807_v0  ;;  %1513 = vmatprep.mubr.msk.bf16.mxu1 %vm567_vm0, %v1807_v0 }
  0x17   : > { %s1448_s26 = sshll.u32 %s1810_s25, 3  ;;  %1630 = vset.pattern.permute.xlu0 %v1700_v43  ;;  %1631 = vset.pattern.permute.xlu1 %v1700_v43  ;;  %s1235_s25 = sld [smem:[#allocation2]] }
  0x18   : > { %s1822_s29 = scalar_lea.vmem %s2136_s1, %s1448_s26  ;;  %s1939_s17 = scalar_lea.vmem %s2135_s0, %s1448_s26 }
  0x19   : > { %v483_v1 = vld [vmem:[%s1822_s29 + $0xf0] sm:$0xff]  ;;  %v484_v2 = vld [vmem:[%s1822_s29 + $0xf8] sm:$0xff]  ;;  %v481_v12 = vld [vmem:[%s1822_s29 + $0xe0] sm:$0xff]  ;;  %s341_s26 = sand.u32 1, %s1690_s12  }
  0x1a   : > { %v515_v3 = vld [vmem:[%s1822_s29 + $0x1f0] sm:$0xff]  ;;  %v532_v4 = vpack.c.bf16 %v484_v2, %v483_v1  ;;  %v516_v5 = vld [vmem:[%s1822_s29 + $0x1f8] sm:$0xff]  ;;  %v482_v14 = vld [vmem:[%s1822_s29 + $0xe8] sm:$0xff]  ;;  %s1357_s15 = scalar_lea.sflag [#allocation4], %s341_s26 }
  0x1b   : > { %v467_v6 = vld [vmem:[%s1822_s29 + $0x70] sm:$0xff]  ;;  %v468_v7 = vld [vmem:[%s1822_s29 + $0x78] sm:$0xff]  ;;  %v548_v8 = vpack.c.bf16 %v516_v5, %v515_v3  ;;  %v513_v15 = vld [vmem:[%s1822_s29 + $0x1e0] sm:$0xff]  ;;  %v531_v18 = vpack.c.bf16 %v482_v14, %v481_v12 }
  0x1c   : > { %v524_v9 = vpack.c.bf16 %v468_v7, %v467_v6  ;;  %v499_v10 = vld [vmem:[%s1822_s29 + $0x170] sm:$0xff]  ;;  %v500_v11 = vld [vmem:[%s1822_s29 + $0x178] sm:$0xff]  ;;  %1557 = vmatprep.subr.msk.bf16.mxu0 %vm567_vm0, %v532_v4  ;;  %v514_v16 = vld [vmem:[%s1822_s29 + $0x1e8] sm:$0xff] }
  0x1d   : > { %v540_v13 = vpack.c.bf16 %v500_v11, %v499_v10  ;;  %1565 = vmatprep.subr.msk.bf16.mxu1 %vm567_vm0, %v548_v8  ;;  %v547_v19 = vpack.c.bf16 %v514_v16, %v513_v15  ;;  %v465_v20 = vld [vmem:[%s1822_s29 + $0x60] sm:$0xff]  ;;  %v466_v21 = vld [vmem:[%s1822_s29 + $0x68] sm:$0xff]  ;;  %v479_v27 = vld [vmem:[%s1822_s29 + $0xd0] sm:$0xff] }
  0x1e   : > { %v596_v17 = vsel %vm567_vm0, %v524_v9, 0  ;;  %v497_v22 = vld [vmem:[%s1822_s29 + $0x160] sm:$0xff]  ;;  %v498_v24 = vld [vmem:[%s1822_s29 + $0x168] sm:$0xff]  ;;  %v523_v25 = vpack.c.bf16 %v466_v21, %v465_v20  ;;  %v480_v28 = vld [vmem:[%s1822_s29 + $0xd8] sm:$0xff] }
  0x1f   : > { %1478 = vmatpush3.bf16.xpose.msra.mxu0 %v596_v17  ;;  %v644_v23 = vsel %vm567_vm0, %v540_v13, 0  ;;  %v539_v26 = vpack.c.bf16 %v498_v24, %v497_v22  ;;  %v511_v29 = vld [vmem:[%s1822_s29 + $0x1d0] sm:$0xff]  ;;  %v512_v30 = vld [vmem:[%s1822_s29 + $0x1d8] sm:$0xff]  ;;  %v530_v32 = vpack.c.bf16 %v480_v28, %v479_v27  ;;  %v477_v41 = vld [vmem:[%s1822_s29 + $0xc0] sm:$0xff] }
  0x20   : > { %1498 = vmatpush3.bf16.xpose.msra.mxu1 %v644_v23  ;;  %1558 = vmatprep.subr.msk.bf16.mxu0 %vm567_vm0, %v531_v18  ;;  %v593_v31 = vsel %vm567_vm0, %v523_v25, 0  ;;  %v546_v34 = vpack.c.bf16 %v512_v30, %v511_v29  ;;  %v463_v35 = vld [vmem:[%s1822_s29 + $0x50] sm:$0xff]  ;;  %v464_v36 = vld [vmem:[%s1822_s29 + $0x58] sm:$0xff]  ;;  %v478_v42 = vld [vmem:[%s1822_s29 + $0xc8] sm:$0xff] }
  0x21   : > { %1566 = vmatprep.subr.msk.bf16.mxu1 %vm567_vm0, %v547_v19  ;;  %v641_v33 = vsel %vm567_vm0, %v539_v26, 0  ;;  %v495_v37 = vld [vmem:[%s1822_s29 + $0x150] sm:$0xff]  ;;  %v496_v38 = vld [vmem:[%s1822_s29 + $0x158] sm:$0xff]  ;;  %v522_v39 = vpack.c.bf16 %v464_v36, %v463_v35  ;;  %v509_v44 = vld [vmem:[%s1822_s29 + $0x1c0] sm:$0xff]  ;;  %v529_v47 = vpack.c.bf16 %v478_v42, %v477_v41 }
  0x22   : > { %v538_v40 = vpack.c.bf16 %v496_v38, %v495_v37  ;;  %v510_v45 = vld [vmem:[%s1822_s29 + $0x1c8] sm:$0xff]  ;;  %v461_v50 = vld [vmem:[%s1822_s29 + $0x40] sm:$0xff]  ;;  %v475_v56 = vld [vmem:[%s1822_s29 + $0xb0] sm:$0xff] }
  0x23   : > { %v590_v46 = vsel %vm567_vm0, %v522_v39, 0  ;;  %v545_v49 = vpack.c.bf16 %v510_v45, %v509_v44  ;;  %v462_v51 = vld [vmem:[%s1822_s29 + $0x48] sm:$0xff]  ;;  %v493_v52 = vld [vmem:[%s1822_s29 + $0x140] sm:$0xff]  ;;  %v476_v57 = vld [vmem:[%s1822_s29 + $0xb8] sm:$0xff] }
  0x24   : > { %v638_v48 = vsel %vm567_vm0, %v538_v40, 0  ;;  %v494_v53 = vld [vmem:[%s1822_s29 + $0x148] sm:$0xff]  ;;  %v521_v54 = vpack.c.bf16 %v462_v51, %v461_v50  ;;  %v507_v58 = vld [vmem:[%s1822_s29 + $0x1b0] sm:$0xff]  ;;  %v508_v59 = vld [vmem:[%s1822_s29 + $0x1b8] sm:$0xff]  ;;  %v528_v61 = vpack.c.bf16 %v476_v57, %v475_v56 }
  0x25   : > { %v537_v55 = vpack.c.bf16 %v494_v53, %v493_v52  ;;  %v544_v63 = vpack.c.bf16 %v508_v59, %v507_v58  ;;  %v459_v1 = vld [vmem:[%s1822_s29 + $0x30] sm:$0xff]  ;;  %v460_v2 = vld [vmem:[%s1822_s29 + $0x38] sm:$0xff]  ;;  %v473_v7 = vld [vmem:[%s1822_s29 + $0xa0] sm:$0xff] }
  0x26   : > { %v587_v60 = vsel %vm567_vm0, %v521_v54, 0  ;;  %v491_v3 = vld [vmem:[%s1822_s29 + $0x130] sm:$0xff]  ;;  %v492_v4 = vld [vmem:[%s1822_s29 + $0x138] sm:$0xff]  ;;  %v520_v5 = vpack.c.bf16 %v460_v2, %v459_v1  ;;  %v474_v8 = vld [vmem:[%s1822_s29 + $0xa8] sm:$0xff] }
  0x27   : > { %1480 = vmatpush3.bf16.xpose.msra.mxu0 %v593_v31  ;;  %v635_v62 = vsel %vm567_vm0, %v537_v55, 0  ;;  %v536_v6 = vpack.c.bf16 %v492_v4, %v491_v3  ;;  %v505_v9 = vld [vmem:[%s1822_s29 + $0x1a0] sm:$0xff]  ;;  %v506_v10 = vld [vmem:[%s1822_s29 + $0x1a8] sm:$0xff]  ;;  %v527_v12 = vpack.c.bf16 %v474_v8, %v473_v7  ;;  %v471_v21 = vld [vmem:[%s1822_s29 + $0x90] sm:$0xff] }
  0x28   : > { %1500 = vmatpush3.bf16.xpose.msra.mxu1 %v641_v33  ;;  %1559 = vmatprep.subr.msk.bf16.mxu0 %vm567_vm0, %v530_v32  ;;  %v584_v11 = vsel %vm567_vm0, %v520_v5, 0  ;;  %v543_v14 = vpack.c.bf16 %v506_v10, %v505_v9  ;;  %v457_v15 = vld [vmem:[%s1822_s29 + $0x20] sm:$0xff]  ;;  %v458_v16 = vld [vmem:[%s1822_s29 + $0x28] sm:$0xff]  ;;  %v472_v22 = vld [vmem:[%s1822_s29 + $0x98] sm:$0xff] }
  0x29   : > { %1567 = vmatprep.subr.msk.bf16.mxu1 %vm567_vm0, %v546_v34  ;;  %v632_v13 = vsel %vm567_vm0, %v536_v6, 0  ;;  %v489_v17 = vld [vmem:[%s1822_s29 + $0x120] sm:$0xff]  ;;  %v490_v18 = vld [vmem:[%s1822_s29 + $0x128] sm:$0xff]  ;;  %v519_v19 = vpack.c.bf16 %v458_v16, %v457_v15  ;;  %v503_v23 = vld [vmem:[%s1822_s29 + $0x190] sm:$0xff]  ;;  %v526_v26 = vpack.c.bf16 %v472_v22, %v471_v21 }
  0x2a   : > { %v535_v20 = vpack.c.bf16 %v490_v18, %v489_v17  ;;  %v504_v24 = vld [vmem:[%s1822_s29 + $0x198] sm:$0xff]  ;;  %v455_v27 = vld [vmem:[%s1822_s29 + $0x10] sm:$0xff]  ;;  %v995_v32 = vld [vmem:[%s2139_s4] sm:$0xff] }
  0x2b   : > { %v581_v25 = vsel %vm567_vm0, %v519_v19, 0  ;;  %v542_v29 = vpack.c.bf16 %v504_v24, %v503_v23  ;;  %v456_v30 = vld [vmem:[%s1822_s29 + $0x18] sm:$0xff]  ;;  %v997_v31 = vld [vmem:[%s2139_s4 + $0x10] sm:$0xff]  ;;  %1001 = vperm.xlu1 %1631, %v995_v32   ;;  %v996_v36 = vld [vmem:[%s2139_s4 + $0x8] sm:$0xff] }
  0x2c   : > { %v629_v28 = vsel %vm567_vm0, %v535_v20, 0  ;;  %v487_v33 = vld [vmem:[%s1822_s29 + $0x110] sm:$0xff]  ;;  %v488_v34 = vld [vmem:[%s1822_s29 + $0x118] sm:$0xff]  ;;  %1011 = vperm.xlu0 %1630, %v997_v31   ;;  %v518_v37 = vpack.c.bf16 %v456_v30, %v455_v27  ;;  %v469_v39 = vld [vmem:[%s1822_s29 + $0x80] sm:$0xff] }
  0x2d   : > { %v998_v35 = vld [vmem:[%s2139_s4 + $0x18] sm:$0xff]  ;;  %v534_v38 = vpack.c.bf16 %v488_v34, %v487_v33  ;;  %v470_v40 = vld [vmem:[%s1822_s29 + $0x88] sm:$0xff]  ;;  %v501_v41 = vld [vmem:[%s1822_s29 + $0x180] sm:$0xff] }
  0x2e   : > { %v502_v42 = vld [vmem:[%s1822_s29 + $0x188] sm:$0xff]  ;;  %v1065_v44 = vld [vmem:[%s2141_s6 + $0x10] sm:$0xff]  ;;  %v1066_v45 = vld [vmem:[%s2141_s6 + $0x18] sm:$0xff] }
  0x2f   : > { %1482 = vmatpush3.bf16.xpose.msra.mxu0 %v590_v46  ;;  %1006 = vperm.xlu1 %1631, %v996_v36   ;;  %v578_v46 = vsel %vm567_vm0, %v518_v37, 0  ;;  %v453_v50 = vld [vmem:[%s1822_s29] sm:$0xff]  ;;  %v454_v51 = vld [vmem:[%s1822_s29 + $0x8] sm:$0xff]  ;;  %v387_v58 = vld [vmem:[%s1939_s17 + $0xf0] sm:$0xff] }
  0x30   : > { %1502 = vmatpush3.bf16.xpose.msra.mxu1 %v638_v48  ;;  %1560 = vmatprep.subr.msk.bf16.mxu0 %vm567_vm0, %v529_v47  ;;  %v525_v47 = vpack.c.bf16 %v470_v40, %v469_v39  ;;  %v626_v48 = vsel %vm567_vm0, %v534_v38, 0  ;;  %v485_v52 = vld [vmem:[%s1822_s29 + $0x100] sm:$0xff]  ;;  %v486_v53 = vld [vmem:[%s1822_s29 + $0x108] sm:$0xff]  ;;  %v517_v56 = vpack.c.bf16 %v454_v51, %v453_v50  ;;  %v388_v59 = vld [vmem:[%s1939_s17 + $0xf8] sm:$0xff]  ;;  %s1446_s29 = sshll.u32 %s341_s26, 2 }
  0x31   : > { %1568 = vmatprep.subr.msk.bf16.mxu1 %vm567_vm0, %v545_v49  ;;  %1016 = vperm.xlu0 %1630, %v998_v35   ;;  %v541_v49 = vpack.c.bf16 %v502_v42, %v501_v41  ;;  %v1063_v54 = vld [vmem:[%s2141_s6] sm:$0xff]  ;;  %v1064_v55 = vld [vmem:[%s2141_s6 + $0x8] sm:$0xff]  ;;  %v533_v57 = vpack.c.bf16 %v486_v53, %v485_v52  ;;  %v371_v3 = vld [vmem:[%s1939_s17 + $0x70] sm:$0xff]  ;;  %s343_s27 = scalar_lea.vmem [#allocation3], %s1446_s29 }
  0x32   : > { %v372_v4 = vld [vmem:[%s1939_s17 + $0x78] sm:$0xff]  ;;  %v403_v5 = vld [vmem:[%s1939_s17 + $0x170] sm:$0xff]  ;;  %v385_v9 = vld [vmem:[%s1939_s17 + $0xe0] sm:$0xff]  ;;  %s1371_s28 = sshll.u32 %s343_s27, 4  ;;  %s1372_s28 = int_to_ptr.vmem [resolvable:$true] %s1371_s28 }
  0x33   : > { %1084 = vperm.xlu1 %1631, %v1066_v45   ;;  %v623_v1 = vsel %vm567_vm0, %v533_v57, 0  ;;  %v404_v6 = vld [vmem:[%s1939_s17 + $0x178] sm:$0xff]  ;;  %v428_v7 = vpack.c.bf16 %v372_v4, %v371_v3  ;;  %v386_v10 = vld [vmem:[%s1939_s17 + $0xe8] sm:$0xff]  ;;  %v369_v17 = vld [vmem:[%s1939_s17 + $0x60] sm:$0xff]  ;;  %p1645_p0 = scmp.lt.s32.totalorder %s1372_s28, %s1643_s23 }
  0x34   : > { %v444_v8 = vpack.c.bf16 %v404_v6, %v403_v5  ;;  %v370_v18 = vld [vmem:[%s1939_s17 + $0x68] sm:$0xff]  ;;  %v401_v20 = vld [vmem:[%s1939_s17 + $0x160] sm:$0xff]  ;;  %v383_v24 = vld [vmem:[%s1939_s17 + $0xd0] sm:$0xff] }
  0x35   : > { %1079 = vperm.xlu0 %1630, %v1065_v44   ;;  %v1633_v19 = vld [vmem:[%s2138_s3 + $0x8] sm:$0xff]   ;;  %v427_v22 = vpack.c.bf16 %v370_v18, %v369_v17  ;;  %v416_v27 = vld [vmem:[%s1939_s17 + $0x1d8] sm:$0xff]  ;;  %v367_v31 = vld [vmem:[%s1939_s17 + $0x50] sm:$0xff] }
  0x36   : > { %v863_v15 = vsel %vm786_vm1, %v444_v8, 0  ;;  %v402_v21 = vld [vmem:[%s1939_s17 + $0x168] sm:$0xff]  ;;  %v368_v32 = vld [vmem:[%s1939_s17 + $0x58] sm:$0xff]  ;;  %v1995_v33 = vld [vmem:[%s2137_s2] sm:$0xff]  }
  0x37   : > { %1484 = vmatpush3.bf16.xpose.msra.mxu0 %v587_v60  ;;  %v419_v60 = vld [vmem:[%s1939_s17 + $0x1f0] sm:$0xff]  ;;  %1074 = vperm.xlu1 %1631, %v1064_v55   ;;  %v443_v23 = vpack.c.bf16 %v402_v21, %v401_v20  ;;  %v400_v35 = vld [vmem:[%s1939_s17 + $0x158] sm:$0xff]  ;;  %v426_v36 = vpack.c.bf16 %v368_v32, %v367_v31  ;;  %v381_v38 = vld [vmem:[%s1939_s17 + $0xc0] sm:$0xff] }
  0x38   : > { %1504 = vmatpush3.bf16.xpose.msra.mxu1 %v635_v62  ;;  %1561 = vmatprep.subr.msk.bf16.mxu0 %vm567_vm0, %v528_v61  ;;  %v420_v61 = vld [vmem:[%s1939_s17 + $0x1f8] sm:$0xff]  ;;  %v575_v62 = vsel %vm567_vm0, %v517_v56, 0  ;;  %v399_v34 = vld [vmem:[%s1939_s17 + $0x150] sm:$0xff]  ;;  %v382_v39 = vld [vmem:[%s1939_s17 + $0xc8] sm:$0xff] }
  0x39   : > { %1569 = vmatprep.subr.msk.bf16.mxu1 %vm567_vm0, %v544_v63  ;;  %1069 = vperm.xlu0 %1630, %v1063_v54   ;;  %v436_v63 = vpack.c.bf16 %v388_v59, %v387_v58  ;;  %v452_v2 = vpack.c.bf16 %v420_v61, %v419_v60  ;;  %v442_v37 = vpack.c.bf16 %v400_v35, %v399_v34  ;;  %v413_v40 = vld [vmem:[%s1939_s17 + $0x1c0] sm:$0xff]  ;;  %v414_v41 = vld [vmem:[%s1939_s17 + $0x1c8] sm:$0xff]  ;;  %v809_v42 = vsel %vm786_vm1, %v426_v36, 0  ;;  %v379_v53 = vld [vmem:[%s1939_s17 + $0xb0] sm:$0xff] }
  0x3a   : > { %v433_v44 = vpack.c.bf16 %v382_v39, %v381_v38  ;;  %v398_v50 = vld [vmem:[%s1939_s17 + $0x148] sm:$0xff]  ;;  %v380_v54 = vld [vmem:[%s1939_s17 + $0xb8] sm:$0xff]  ;;  %v411_v55 = vld [vmem:[%s1939_s17 + $0x1b0] sm:$0xff] }
  0x3b   : > { %v857_v45 = vsel %vm786_vm1, %v442_v37, 0  ;;  %v412_v56 = vld [vmem:[%s1939_s17 + $0x1b8] sm:$0xff]  ;;  %v432_v58 = vpack.c.bf16 %v380_v54, %v379_v53  ;;  %v363_v61 = vld [vmem:[%s1939_s17 + $0x30] sm:$0xff]  ;;  %v377_v4 = vld [vmem:[%s1939_s17 + $0xa0] sm:$0xff] }
  0x3c   : > { %v448_v60 = vpack.c.bf16 %v412_v56, %v411_v55  ;;  %v378_v5 = vld [vmem:[%s1939_s17 + $0xa8] sm:$0xff]  ;;  %v409_v6 = vld [vmem:[%s1939_s17 + $0x1a0] sm:$0xff]  ;;  %v375_v18 = vld [vmem:[%s1939_s17 + $0x90] sm:$0xff] }
  0x3d   : > { %v407_v20 = vld [vmem:[%s1939_s17 + $0x190] sm:$0xff]  ;;  %v408_v21 = vld [vmem:[%s1939_s17 + $0x198] sm:$0xff]  ;;  %v373_v31 = vld [vmem:[%s1939_s17 + $0x80] sm:$0xff] }
  0x3e   : > { %v374_v32 = vld [vmem:[%s1939_s17 + $0x88] sm:$0xff]  ;;  %v405_v34 = vld [vmem:[%s1939_s17 + $0x180] sm:$0xff] }
  0x3f   : > { %1486 = vmatpush3.bf16.xpose.msra.mxu0 %v584_v11  ;;  %v417_v11 = vld [vmem:[%s1939_s17 + $0x1e0] sm:$0xff]  ;;  %v406_v35 = vld [vmem:[%s1939_s17 + $0x188] sm:$0xff]  ;;  %v429_v37 = vpack.c.bf16 %v374_v32, %v373_v31 }
  0x40   : > { %1506 = vmatpush3.bf16.xpose.msra.mxu1 %v632_v13  ;;  %1562 = vmatprep.subr.msk.bf16.mxu0 %vm567_vm0, %v527_v12  ;;  %v418_v12 = vld [vmem:[%s1939_s17 + $0x1e8] sm:$0xff]  ;;  %v815_v13 = vsel %vm786_vm1, %v428_v7, 0  ;;  %v445_v39 = vpack.c.bf16 %v406_v35, %v405_v34 }
  0x41   : > { %1570 = vmatprep.subr.msk.bf16.mxu1 %vm567_vm0, %v543_v14  ;;  %v435_v14 = vpack.c.bf16 %v386_v10, %v385_v9  ;;  %v451_v16 = vpack.c.bf16 %v418_v12, %v417_v11  ;;  %v410_v7 = vld [vmem:[%s1939_s17 + $0x1a8] sm:$0xff]  ;;  %v431_v9 = vpack.c.bf16 %v378_v5, %v377_v4  ;;  %v361_v12 = vld [vmem:[%s1939_s17 + $0x20] sm:$0xff] }
  0x42   : > { %v447_v11 = vpack.c.bf16 %v410_v7, %v409_v6 }
  0x47   : > { %1488 = vmatpush3.bf16.xpose.msra.mxu0 %v581_v25  ;;  %v384_v25 = vld [vmem:[%s1939_s17 + $0xd8] sm:$0xff] }
  0x48   : > { %1508 = vmatpush3.bf16.xpose.msra.mxu1 %v629_v28  ;;  %1563 = vmatprep.subr.msk.bf16.mxu0 %vm567_vm0, %v526_v26  ;;  %v415_v26 = vld [vmem:[%s1939_s17 + $0x1d0] sm:$0xff]  ;;  %v434_v28 = vpack.c.bf16 %v384_v25, %v383_v24  ;;  %v446_v25 = vpack.c.bf16 %v408_v21, %v407_v20 }
  0x49   : > { %1571 = vmatprep.subr.msk.bf16.mxu1 %vm567_vm0, %v542_v29  ;;  %v860_v29 = vsel %vm786_vm1, %v443_v23, 0  ;;  %v450_v30 = vpack.c.bf16 %v416_v27, %v415_v26  ;;  %v359_v26 = vld [vmem:[%s1939_s17 + $0x10] sm:$0xff]  ;;  %v360_v27 = vld [vmem:[%s1939_s17 + $0x18] sm:$0xff] }
  0x4f   : > { %1490 = vmatpush3.bf16.xpose.msra.mxu0 %v578_v46  ;;  %v449_v46 = vpack.c.bf16 %v414_v41, %v413_v40  ;;  %v357_v40 = vld [vmem:[%s1939_s17] sm:$0xff]  ;;  %v358_v41 = vld [vmem:[%s1939_s17 + $0x8] sm:$0xff] }
  0x50   : > { %1510 = vmatpush3.bf16.xpose.msra.mxu1 %v626_v48  ;;  %1564 = vmatprep.subr.msk.bf16.mxu0 %vm567_vm0, %v525_v47  ;;  %v365_v47 = vld [vmem:[%s1939_s17 + $0x40] sm:$0xff]  ;;  %v366_v48 = vld [vmem:[%s1939_s17 + $0x48] sm:$0xff] }
  0x51   : > { %1572 = vmatprep.subr.msk.bf16.mxu1 %vm567_vm0, %v541_v49  ;;  %v397_v49 = vld [vmem:[%s1939_s17 + $0x140] sm:$0xff]  ;;  %v425_v51 = vpack.c.bf16 %v366_v48, %v365_v47 }
  0x52   : > { %v441_v52 = vpack.c.bf16 %v398_v50, %v397_v49  ;;  %v1635_v49 = vld [vmem:[%s2137_s2 + $0x8] sm:$0xff]  }
  0x53   : > { %v806_v57 = vsel %vm786_vm1, %v425_v51, 0 }
  0x54   : > { %v854_v59 = vsel %vm786_vm1, %v441_v52, 0 }
  0x57   : > { %1492 = vmatpush3.bf16.xpose.msra.mxu0 %v575_v62  ;;  %v364_v62 = vld [vmem:[%s1939_s17 + $0x38] sm:$0xff] }
  0x58   : > { %1512 = vmatpush3.bf16.xpose.msra.mxu1 %v623_v1  ;;  %1573 = vmatprep.subr.msk.bf16.mxu0 %vm786_vm1, %v436_v63  ;;  %v395_v63 = vld [vmem:[%s1939_s17 + $0x130] sm:$0xff]  ;;  %v396_v1 = vld [vmem:[%s1939_s17 + $0x138] sm:$0xff] }
  0x59   : > { %1581 = vmatprep.subr.msk.bf16.mxu1 %vm786_vm1, %v452_v2  ;;  %v424_v2 = vpack.c.bf16 %v364_v62, %v363_v61  ;;  %v440_v3 = vpack.c.bf16 %v396_v1, %v395_v63 }
  0x5b   : > { %v803_v8 = vsel %vm786_vm1, %v424_v2, 0  ;;  %v851_v10 = vsel %vm786_vm1, %v440_v3, 0 }
  0x5e   : > { %1494 = vmatmul.mubr.msk.bf16.vlgmr.msra.gmra.mxu0 %vm567_vm0, %v1807_v0 }
  0x5f   : > { %1514 = vmatmul.mubr.msk.bf16.vlgmr.msra.gmra.mxu1 %vm567_vm0, %v1807_v0  ;;  %1518 = vmatpush3.bf16.xpose.msra.mxu0 %v815_v13  ;;  %v812_v0 = vsel %vm786_vm1, %v427_v22, 0  ;;  %v362_v13 = vld [vmem:[%s1939_s17 + $0x28] sm:$0xff] }
  0x60   : > { %1538 = vmatpush3.bf16.xpose.msra.mxu1 %v863_v15  ;;  %1574 = vmatprep.subr.msk.bf16.mxu0 %vm786_vm1, %v435_v14  ;;  %v393_v14 = vld [vmem:[%s1939_s17 + $0x120] sm:$0xff]  ;;  %v394_v15 = vld [vmem:[%s1939_s17 + $0x128] sm:$0xff] }
  0x61   : > { %1582 = vmatprep.subr.msk.bf16.mxu1 %vm786_vm1, %v451_v16  ;;  %1495 = vmatprep.mubr.msk.bf16.mxu0 %vm567_vm0, %v1633_v19  ;;  %v423_v16 = vpack.c.bf16 %v362_v13, %v361_v12  ;;  %v439_v17 = vpack.c.bf16 %v394_v15, %v393_v14 }
  0x62   : > { %1515 = vmatprep.mubr.msk.bf16.mxu1 %vm567_vm0, %v1633_v19 }
  0x63   : > { %v800_v22 = vsel %vm786_vm1, %v423_v16, 0  ;;  %v848_v24 = vsel %vm786_vm1, %v439_v17, 0 }
  0x66   : > { %1496 = vmatmul.mubr.msk.bf16.gmra.mxu0 %vm567_vm0, %v1633_v19 }
  0x67   : > { %1520 = vmatpush3.bf16.xpose.msra.mxu0 %v812_v0  ;;  %1516 = vmatmul.mubr.msk.bf16.gmra.mxu1 %vm567_vm0, %v1633_v19  ;;  %v376_v19 = vld [vmem:[%s1939_s17 + $0x98] sm:$0xff]  ;;  %v391_v0 = vld [vmem:[%s1939_s17 + $0x110] sm:$0xff] }
  0x68   : > { %1540 = vmatpush3.bf16.xpose.msra.mxu1 %v860_v29  ;;  %1575 = vmatprep.subr.msk.bf16.mxu0 %vm786_vm1, %v434_v28  ;;  %v430_v23 = vpack.c.bf16 %v376_v19, %v375_v18  ;;  %v392_v28 = vld [vmem:[%s1939_s17 + $0x118] sm:$0xff]  ;;  %v422_v29 = vpack.c.bf16 %v360_v27, %v359_v26 }
  0x69   : > { %1583 = vmatprep.subr.msk.bf16.mxu1 %vm786_vm1, %v450_v30  ;;  %1533 = vmatprep.mubr.msk.bf16.mxu0 %vm786_vm1, %v1995_v33  ;;  %v438_v30 = vpack.c.bf16 %v392_v28, %v391_v0 }
  0x6a   : > { %1553 = vmatprep.mubr.msk.bf16.mxu1 %vm786_vm1, %v1995_v33  ;;  %v797_v36 = vsel %vm786_vm1, %v422_v29, 0 }
  0x6b   : > { %v845_v38 = vsel %vm786_vm1, %v438_v30, 0 }
  0x6f   : > { %1522 = vmatpush3.bf16.xpose.msra.mxu0 %v809_v42  ;;  %v389_v42 = vld [vmem:[%s1939_s17 + $0x100] sm:$0xff] }
  0x70   : > { %1542 = vmatpush3.bf16.xpose.msra.mxu1 %v857_v45  ;;  %1576 = vmatprep.subr.msk.bf16.mxu0 %vm786_vm1, %v433_v44  ;;  %v390_v44 = vld [vmem:[%s1939_s17 + $0x108] sm:$0xff]  ;;  %v421_v45 = vpack.c.bf16 %v358_v41, %v357_v40  ;;  %s1638_s17 = scalar_lea.vmem %s1372_s28, 64 }
  0x71   : > { %1584 = vmatprep.subr.msk.bf16.mxu1 %vm786_vm1, %v449_v46  ;;  %v437_v46 = vpack.c.bf16 %v390_v44, %v389_v42  ;;  %p1639_p11 = scmp.ne.s32.totalorder %s1372_s28, %s1638_s17  ;;  %p1646_p1 = scmp.lt.s32.totalorder %s1644_s24, %s1638_s17 }
  0x72   : > { %v794_v47 = vsel %vm786_vm1, %v421_v45, 0 }
  0x73   : > { %v842_v48 = vsel %vm786_vm1, %v437_v46, 0  ;;  %p1640_p12 = pnand %p1639_p11, %p1791_p5  ;;  %p1647_p2 = por %p1646_p1, %p1645_p0 }
  0x75   : > { %p1641_p13 = pneg %p1640_p12 }
  0x77   : > { %1524 = vmatpush3.bf16.xpose.msra.mxu0 %v806_v57  ;;  %p1648_p3 = pnand %p1647_p2, %p1641_p13 }
  0x78   : > { %1544 = vmatpush3.bf16.xpose.msra.mxu1 %v854_v59  ;;  %1577 = vmatprep.subr.msk.bf16.mxu0 %vm786_vm1, %v432_v58 }
  0x79   : > { %1585 = vmatprep.subr.msk.bf16.mxu1 %vm786_vm1, %v448_v60 }
  0x7f   : > { %1526 = vmatpush3.bf16.xpose.msra.mxu0 %v803_v8 }
  0x80   : > { %1546 = vmatpush3.bf16.xpose.msra.mxu1 %v851_v10  ;;  %1578 = vmatprep.subr.msk.bf16.mxu0 %vm786_vm1, %v431_v9 }
  0x81   : > { %1586 = vmatprep.subr.msk.bf16.mxu1 %vm786_vm1, %v447_v11 }
  0x87   : > { %1528 = vmatpush3.bf16.xpose.msra.mxu0 %v800_v22 }
  0x88   : > { %1548 = vmatpush3.bf16.xpose.msra.mxu1 %v848_v24  ;;  %1579 = vmatprep.subr.msk.bf16.mxu0 %vm786_vm1, %v430_v23 }
  0x89   : > { %1587 = vmatprep.subr.msk.bf16.mxu1 %vm786_vm1, %v446_v25 }
  0x8f   : > { %1530 = vmatpush3.bf16.xpose.msra.mxu0 %v797_v36 }
  0x90   : > { %1550 = vmatpush3.bf16.xpose.msra.mxu1 %v845_v38  ;;  %1580 = vmatprep.subr.msk.bf16.mxu0 %vm786_vm1, %v429_v37 }
  0x91   : > { %1588 = vmatprep.subr.msk.bf16.mxu1 %vm786_vm1, %v445_v39 }
  0x97   : > { %1532 = vmatpush3.bf16.xpose.msra.mxu0 %v794_v47 }
  0x98   : > { %1552 = vmatpush3.bf16.xpose.msra.mxu1 %v842_v48 }
  0x9e   : > { %1534 = vmatmul.mubr.msk.bf16.vlgmr.msra.gmra.mxu0 %vm786_vm1, %v1995_v33 }
  0x9f   : > { %1554 = vmatmul.mubr.msk.bf16.vlgmr.msra.gmra.mxu1 %vm786_vm1, %v1995_v33  ;;  %1535 = vmatprep.mubr.msk.bf16.mxu0 %vm786_vm1, %v1635_v49 }
  0xa0   : > { %1555 = vmatprep.mubr.msk.bf16.mxu1 %vm786_vm1, %v1635_v49 }
  0xa6   : > { %1536 = vmatmul.mubr.msk.bf16.gmra.mxu0 %vm786_vm1, %v1635_v49  ;;  %v1002_v9 = vpop.permute.xlu1 %1001 }
  0xa7   : > { %1556 = vmatmul.mubr.msk.bf16.gmra.mxu1 %vm786_vm1, %v1635_v49  ;;  %1136 = vmatprep.mubr.bf16.mxu0 %v1700_v43  ;;  %v1012_v11 = vpop.permute.xlu0 %1011 }
  0xa8   : > { %1189 = vmatprep.mubr.bf16.mxu1 %v1700_v43 }
  0xaa   : > { %v1007_v27 = vpop.permute.xlu1 %1006 }
  0xac   : > { %v1017_v30 = vpop.permute.xlu0 %1016 }
 0x11e   : > { %v704_v50 = vpop.f32.mrf.mxu0 }
 0x11f   : > { %v757_v51 = vpop.f32.mrf.mxu1 }
 0x120   : > { %v706_v52 = vpop.f32.mrf.mxu0 }
 0x121   : > { %v759_v53 = vpop.f32.mrf.mxu1 }
 0x122   : > { %v708_v54 = vpop.f32.mrf.mxu0 }
 0x123   : > { %v761_v55 = vpop.f32.mrf.mxu1 }
 0x124   : > { %v710_v56 = vpop.f32.mrf.mxu0 }
 0x125   : > { %v763_v33 = vpop.f32.mrf.mxu1 }
 0x126   : > { %v714_v57 = vpop.f32.mrf.mxu0 }
 0x127   : > { %v767_v58 = vpop.f32.mrf.mxu1 }
 0x128   : > { %v716_v59 = vpop.f32.mrf.mxu0 }
 0x129   : > { %v769_v60 = vpop.f32.mrf.mxu1 }
 0x12a   : > { %v718_v61 = vpop.f32.mrf.mxu0 }
 0x12b   : > { %v771_v62 = vpop.f32.mrf.mxu1 }
 0x12c   : > { %v720_v63 = vpop.f32.mrf.mxu0 }
 0x12d   : > { %v773_v1 = vpop.f32.mrf.mxu1 }
 0x15e   : > { %v923_v2 = vpop.f32.mrf.mxu0 }
 0x15f   : > { %v976_v3 = vpop.f32.mrf.mxu1  ;;  %v924_v12 = vadd.f32 %v923_v2, %v704_v50 }
 0x160   : > { %v925_v4 = vpop.f32.mrf.mxu0  ;;  %v977_v20 = vadd.f32 %v976_v3, %v757_v51 }
 0x161   : > { %v978_v5 = vpop.f32.mrf.mxu1  ;;  %v1019_v21 = vadd.f32 %v1002_v9, %v924_v12  ;;  %v926_v25 = vadd.f32 %v925_v4, %v706_v52 }
 0x162   : > { %v927_v6 = vpop.f32.mrf.mxu0  ;;  %v979_v26 = vadd.f32 %v978_v5, %v759_v53 }
 0x163   : > { %v980_v7 = vpop.f32.mrf.mxu1  ;;  %v928_v31 = vadd.f32 %v927_v6, %v708_v54  ;;  %v1020_v47 = vadd.f32 %v1002_v9, %v926_v25 }
 0x164   : > { %v929_v8 = vpop.f32.mrf.mxu0  ;;  %v981_v32 = vadd.f32 %v980_v7, %v761_v55  ;;  %v1022_v48 = vadd.f32 %v1002_v9, %v979_v26 }
 0x165   : > { %v982_v10 = vpop.f32.mrf.mxu1  ;;  %v930_v15 = vadd.f32 %v929_v8, %v710_v56  ;;  %v1023_v51 = vadd.f32 %v1007_v27, %v928_v31 }
 0x166   : > { %v933_v13 = vpop.f32.mrf.mxu0  ;;  %v983_v17 = vadd.f32 %v982_v10, %v763_v33  ;;  %v1025_v52 = vadd.f32 %v1007_v27, %v981_v32  ;;  %v1038_v3 = vmax.f32 %v1022_v48, 0.0 }
 0x167   : > { %v986_v14 = vpop.f32.mrf.mxu1  ;;  %v934_v22 = vadd.f32 %v933_v13, %v714_v57  ;;  %v1024_v34 = vadd.f32 %v1007_v27, %v930_v15  ;;  %v1039_v4 = vmax.f32 %v1023_v51, 0.0  ;;  %v1636_v15 = vld [vmem:[%s2140_s5] sm:$0xff]  }
 0x168   : > { %v935_v16 = vpop.f32.mrf.mxu0  ;;  %v987_v0 = vadd.f32 %v986_v14, %v767_v58  ;;  %v1026_v37 = vadd.f32 %v1007_v27, %v983_v17  ;;  %v1041_v7 = vmax.f32 %v1025_v52, 0.0 }
 0x169   : > { %v936_v18 = vadd.f32 %v935_v16, %v716_v59  ;;  %v988_v19 = vpop.f32.mrf.mxu1  ;;  %v1027_v42 = vadd.f32 %v1012_v11, %v934_v22  ;;  %v1040_v55 = vmax.f32 %v1024_v34, 0.0  ;;  %v1637_v16 = vld [vmem:[%s2140_s5 + $0x8] sm:$0xff]   ;;  %v1080_v22 = vpop.permute.xlu0 %1079 }
 0x16a   : > { %v989_v23 = vadd.f32 %v988_v19, %v769_v60  ;;  %v937_v24 = vpop.f32.mrf.mxu0  ;;  %v1029_v49 = vadd.f32 %v1012_v11, %v987_v0  ;;  %v1042_v58 = vmax.f32 %v1026_v37, 0.0 }
 0x16b   : > { %v938_v28 = vadd.f32 %v937_v24, %v718_v61  ;;  %v990_v29 = vpop.f32.mrf.mxu1  ;;  %v1028_v38 = vadd.f32 %v1012_v11, %v936_v18  ;;  %v1043_v59 = vmax.f32 %v1027_v42, 0.0  ;;  %v1085_v24 = vpop.permute.xlu1 %1084 }
 0x16c   : > { %v991_v35 = vadd.f32 %v990_v29, %v771_v62  ;;  %v939_v36 = vpop.f32.mrf.mxu0  ;;  %v1030_v44 = vadd.f32 %v1012_v11, %v989_v23  ;;  %v1021_v62 = vadd.f32 %v1002_v9, %v977_v20  ;;  %v1045_v2 = vmax.f32 %v1029_v49, 0.0 }
 0x16d   : > { %v1031_v39 = vadd.f32 %v1017_v30, %v938_v28  ;;  %v940_v40 = vadd.f32 %v939_v36, %v720_v63  ;;  %v992_v41 = vpop.f32.mrf.mxu1  ;;  %v1044_v56 = vmax.f32 %v1028_v38, 0.0  ;;  %v1036_v63 = vmax.f32 %v1020_v47, 0.0  ;;  %v1070_v29 = vpop.permute.xlu0 %1069 }
 0x16e   : > { %v1033_v45 = vadd.f32 %v1017_v30, %v991_v35  ;;  %v993_v46 = vadd.f32 %v992_v41, %v773_v1  ;;  %v1046_v60 = vmax.f32 %v1030_v44, 0.0  ;;  %v1035_v11 = vmax.f32 %v1019_v21, 0.0 }
 0x16f   : > { %v1032_v50 = vadd.f32 %v1017_v30, %v940_v40  ;;  %v1047_v53 = vmax.f32 %v1031_v39, 0.0  ;;  %v1056_v10 = vpack.c.bf16 %v1040_v55, %v1036_v63  ;;  %v1058_v12 = vpack.c.bf16 %v1042_v58, %v1038_v3  ;;  %v1075_v31 = vpop.permute.xlu1 %1074 }
 0x170   : > { %v1034_v54 = vadd.f32 %v1017_v30, %v993_v46  ;;  %v1049_v33 = vmax.f32 %v1033_v45, 0.0  ;;  %v1037_v13 = vmax.f32 %v1021_v62, 0.0  ;;  %v1055_v9 = vpack.c.bf16 %v1039_v4, %v1035_v11 }
 0x171   : > { %v1048_v57 = vmax.f32 %v1032_v50, 0.0  ;;  %v1059_v5 = vpack.c.bf16 %v1047_v53, %v1043_v59 }
 0x172   : > { %v1050_v61 = vmax.f32 %v1034_v54, 0.0  ;;  %v1061_v8 = vpack.c.bf16 %v1049_v33, %v1045_v2  ;;  %v1057_v14 = vpack.c.bf16 %v1041_v7, %v1037_v13 }
 0x173   : > { %v1060_v1 = vpack.c.bf16 %v1048_v57, %v1044_v56 }
 0x174   : > { %v1062_v6 = vpack.c.bf16 %v1050_v61, %v1046_v60 }
 0x175   : > { %1116 = vmatprep.subr.bf16.mxu0 %v1060_v1 }
 0x176   : > { %1169 = vmatprep.subr.bf16.mxu1 %v1062_v6  ;;  %1117 = vmatpush1.bf16.msra.mxu0 %v1059_v5 }
 0x177   : > { %1170 = vmatpush1.bf16.msra.mxu1 %v1061_v8  ;;  %1118 = vmatprep.subr.bf16.mxu0 %v1056_v10 }
 0x178   : > { %1171 = vmatprep.subr.bf16.mxu1 %v1058_v12 }
 0x17a   : > { %1119 = vmatpush1.bf16.msra.mxu0 %v1055_v9  ;;  %v1226_v9 = vld [vmem:[%s2142_s7] sm:$0x1] }
 0x17b   : > { %1172 = vmatpush1.bf16.msra.mxu1 %v1057_v14  ;;  %v1701_v14 = vmov 1966171168  }
 0x17d   : > { %1465 = vmatmul.mubr.msk.bf16.vlgmr.msra.gmra.mxu0 %vm1097_vm2, %v1636_v15 }
 0x17e   : > { %1467 = vmatmul.mubr.msk.bf16.vlgmr.msra.gmra.mxu1 %vm1097_vm2, %v1636_v15  ;;  %1146 = vmatprep.mubr.bf16.mxu0 %v1700_v43  ;;  %v1329_v15 = vunpack.c.l.s4 %v1701_v14 }
 0x17f   : > { %1199 = vmatprep.mubr.bf16.mxu1 %v1700_v43 }
 0x185   : > { %1466 = vmatmul.mubr.msk.bf16.gmra.mxu0 %vm1097_vm2, %v1637_v16 }
 0x186   : > { %1468 = vmatmul.mubr.msk.bf16.gmra.mxu1 %vm1097_vm2, %v1637_v16  ;;  %1272 = vmatprep.mubr.bf16.mxu0 %v1700_v43  ;;  %v1331_v16 = vlaneseq }
 0x187   : > { %1313 = vmatprep.mubr.bf16.mxu1 %v1700_v43 }
 0x188   : > { %vm1353_vm3 = vcmp.lt.s32.totalorder %v1331_v16, 512 }
 0x23d   : > { %v1138_v17 = vpop.f32.mrf.mxu0 }
 0x23e   : > { %v1191_v18 = vpop.f32.mrf.mxu1  ;;  %v1139_v34 = vadd.f32 %v1138_v17, %v1070_v29  ;;  %v1330_v17 = vunpack.c.0.s8 %v1329_v15 }
 0x23f   : > { %v1140_v19 = vpop.f32.mrf.mxu0  ;;  %v1192_v60 = vadd.f32 %v1191_v18, %v1070_v29  ;;  %v1332_v18 = vshrl.u32 %v1331_v16, 7 }
 0x240   : > { %v1193_v20 = vpop.f32.mrf.mxu1  ;;  %v1141_v44 = vadd.f32 %v1140_v19, %v1070_v29  ;;  %v1210_v8 = vmax.f32 %v1139_v34, 0.0  ;;  %v1236_v19 = vstv %s1235_s25 }
 0x241   : > { %v1142_v21 = vpop.f32.mrf.mxu0  ;;  %v1194_v45 = vadd.f32 %v1193_v20, %v1070_v29  ;;  %v1212_v11 = vmax.f32 %v1192_v60, 0.0 }
 0x242   : > { %v1195_v23 = vpop.f32.mrf.mxu1  ;;  %v1143_v49 = vadd.f32 %v1142_v21, %v1075_v31  ;;  %v1211_v61 = vmax.f32 %v1141_v44, 0.0 }
 0x243   : > { %v1144_v25 = vpop.f32.mrf.mxu0  ;;  %v1196_v50 = vadd.f32 %v1195_v23, %v1075_v31  ;;  %v1213_v2 = vmax.f32 %v1194_v45, 0.0 }
 0x244   : > { %v1197_v26 = vpop.f32.mrf.mxu1  ;;  %v1145_v35 = vadd.f32 %v1144_v25, %v1075_v31  ;;  %v1214_v1 = vmax.f32 %v1143_v49, 0.0  ;;  %v1333_v25 = vsub.s32 %v1330_v17, %v1332_v18 }
 0x245   : > { %v1148_v27 = vpop.f32.mrf.mxu0  ;;  %v1198_v38 = vadd.f32 %v1197_v26, %v1075_v31  ;;  %v1216_v5 = vmax.f32 %v1196_v50, 0.0 }
 0x246   : > { %v1201_v0 = vpop.f32.mrf.mxu1  ;;  %v1149_v39 = vadd.f32 %v1148_v27, %v1080_v22  ;;  %v1215_v53 = vmax.f32 %v1145_v35, 0.0  ;;  %v1227_v12 = vpack.c.bf16 %v1214_v1, %v1210_v8 }
 0x247   : > { %v1150_v28 = vpop.f32.mrf.mxu0  ;;  %v1202_v46 = vadd.f32 %v1201_v0, %v1080_v22  ;;  %v1217_v33 = vmax.f32 %v1198_v38, 0.0  ;;  %v1229_v13 = vpack.c.bf16 %v1216_v5, %v1212_v11 }
 0x248   : > { %v1203_v30 = vpop.f32.mrf.mxu1  ;;  %v1151_v43 = vadd.f32 %v1150_v28, %v1080_v22  ;;  %v1218_v57 = vmax.f32 %v1149_v39, 0.0  ;;  %v1228_v6 = vpack.c.bf16 %v1215_v53, %v1211_v61 }
 0x249   : > { %v1152_v32 = vpop.f32.mrf.mxu0  ;;  %v1204_v40 = vadd.f32 %v1203_v30, %v1080_v22  ;;  %v1220_v62 = vmax.f32 %v1202_v46, 0.0  ;;  %v1230_v10 = vpack.c.bf16 %v1217_v33, %v1213_v2 }
 0x24a   : > { %v1153_v36 = vadd.f32 %v1152_v32, %v1085_v24  ;;  %v1205_v37 = vpop.f32.mrf.mxu1  ;;  %v1219_v54 = vmax.f32 %v1151_v43, 0.0 }
 0x24b   : > { %v1206_v41 = vadd.f32 %v1205_v37, %v1085_v24  ;;  %v1154_v42 = vpop.f32.mrf.mxu0  ;;  %v1221_v58 = vmax.f32 %v1204_v40, 0.0 }
 0x24c   : > { %v1155_v47 = vadd.f32 %v1154_v42, %v1085_v24  ;;  %v1207_v48 = vpop.f32.mrf.mxu1  ;;  %v1222_v51 = vmax.f32 %v1153_v36, 0.0 }
 0x24d   : > { %v1208_v52 = vadd.f32 %v1207_v48, %v1085_v24  ;;  %v1224_v55 = vmax.f32 %v1206_v41, 0.0 }
 0x24e   : > { %v1223_v56 = vmax.f32 %v1155_v47, 0.0  ;;  %v1231_v3 = vpack.c.bf16 %v1222_v51, %v1218_v57 }
 0x24f   : > { %v1225_v59 = vmax.f32 %v1208_v52, 0.0  ;;  %v1233_v7 = vpack.c.bf16 %v1224_v55, %v1220_v62 }
 0x250   : > { %v1232_v63 = vpack.c.bf16 %v1223_v56, %v1219_v54 }
 0x251   : > { %v1234_v4 = vpack.c.bf16 %v1225_v59, %v1221_v58 }
 0x252   : > { %1252 = vmatprep.subr.bf16.mxu0 %v1232_v63 }
 0x253   : > { %1293 = vmatprep.subr.bf16.mxu1 %v1234_v4  ;;  %1253 = vmatpush1.bf16.msra.mxu0 %v1231_v3 }
 0x254   : > { %1294 = vmatpush1.bf16.msra.mxu1 %v1233_v7  ;;  %1254 = vmatprep.subr.bf16.mxu0 %v1228_v6 }
 0x255   : > { %1295 = vmatprep.subr.bf16.mxu1 %v1230_v10 }
 0x257   : > { %1255 = vmatpush1.bf16.msra.mxu0 %v1227_v12 }
 0x258   : > { %1296 = vmatpush1.bf16.msra.mxu1 %v1229_v13 }
 0x25a   : > { %1469 = vmatmul.mubr.msk.bf16.vlgmr.msra.gmra.mxu0 %vm1097_vm2, %v1226_v9 }
 0x25b   : > { %1470 = vmatmul.mubr.msk.bf16.vlgmr.msra.gmra.mxu1 %vm1097_vm2, %v1226_v9 }
 0x31a   : > { %v1274_v20 = vpop.f32.mrf.mxu0 }
 0x31b   : > { %v1315_v21 = vpop.f32.mrf.mxu1  ;;  %v1275_v23 = vadd.f32 %v1274_v20, %v1236_v19 }
 0x31c   : > { %v1276_v22 = vpop.f32.mrf.mxu0  ;;  %v1316_v27 = vadd.f32 %v1315_v21, %v1236_v19 }
 0x31d   : > { %v1277_v24 = vadd.f32 %v1276_v22, %v1236_v19  ;;  %v1317_v26 = vpop.f32.mrf.mxu1 }
 0x31e   : > { %v1318_v0 = vadd.f32 %v1317_v26, %v1236_v19  ;;  %v1278_v28 = vpop.f32.mrf.mxu0 }
 0x31f   : > { %v1326_v29 = vcombine.low %v1275_v23, %v1277_v24  ;;  %v1319_v30 = vpop.f32.mrf.mxu1 }
 0x320   : > { %v1327_v31 = vcombine.low %v1316_v27, %v1318_v0  ;;  %v1279_v32 = vpop.f32.mrf.mxu0 }
 0x321   : > { %v1334_v34 = vrot.slane %v1326_v29, %v1333_v25  ;;  %v1320_v35 = vpop.f32.mrf.mxu1 }
 0x322   : > { %v1341_v43 = vrot.slane %v1327_v31, %v1333_v25 }
 0x324   : > { %v1342_v36 = vcombine.low %v1334_v34, %v1341_v43 }
 0x326   : > { %v1349_v37 = vrot.slane %v1342_v36, %v1333_v25 }
 0x328   : > { %1355 = vst.msk [vmem:[%s343_s27] sm:$0xf] %vm1353_vm3, %v1349_v37 }
 0x329   : > { %1651 = shalt.err (!%p1648_p3)
}
 0x32a   : > { %s1652_s25 = scalar_lea.hbm %s1369_s8, 64  ;;  %s1656_s29 = scalar_lea.hbm %s2144_s9, 128 }
 0x32b   : > { %p1653_p4 = scmp.ne.s32.totalorder %s1369_s8, %s1652_s25  ;;  %p1657_p9 = scmp.lt.s32.totalorder %s1369_s8, %s2144_s9 }
 0x32c   : > { %p1658_p10 = scmp.lt.s32.totalorder %s1656_s29, %s1652_s25 }
 0x32d   : > { %p1654_p7 = pnand %p1653_p4, %p1791_p5 }
 0x32e   : > { %p1659_p11 = por %p1658_p10, %p1657_p9 }
 0x32f   : > { %p1655_p8 = pneg %p1654_p7 }
 0x331   : > { %p1660_p12 = pnand %p1659_p11, %p1655_p8 }
 0x333   : > { %1663 = shalt.err (!%p1660_p12)
}
 0x334   : > { %1589 = dma.vmem_to_hbm [thread:$0]  (%p1791_p5), %s1372_s28, 64, %s1369_s8, %s1357_s15  }
 0x335 PF: > { %p1595_p13 = scmp.ge.s32.totalorder %s1698_s14, 2  ;;  %s1383_s10 = sand.u32 1, %s1686_s11  }
 0x336   : > { %s1384_s17 = scalar_lea.sflag [#allocation4], %s1383_s10 }
 0x337   : > { %p1592_p0 = pnand %p1595_p13, %p1795_p6 }
 0x339   : > { %p1593_p1 = pneg %p1592_p0 }
 0x33b   : > { %1681 = dma.done.wait (%p1593_p1), %s1384_s17, 64  }
 0x33c   : > { %1683 = vsyncadd (%p1593_p1), %s1384_s17, 4294967232  ;;  %p20_p2 = scmp.ge.s32.totalorder %s1779_s16, 4   ;;  %s2147_s11 = smov %s1690_s12 }
 0x33d   : > { %s2148_s12 = smov %s1694_s13  ;;  %s2149_s13 = smov %s1789_s19 }
 0x33e   : > { %s2150_s14 = smov %s1779_s16  ;;  %22 = sbr.rel (!%p20_p2) target bundleno = 5 (0x5), region = 94 }
 0x343   :  { %1389 = vsyncpa [#allocation4], 1 }
 0x344   :  { %1391 = vsyncpa [#allocation4 + $0x1], 1 }

</bundles_post_ra>
